<compile_context>
chip_gen: v7x
topology: tpu7x:2x2x1
jax: 0.10.0
libtpu: 0.0.40
codegen_flags: <defaults>
</compile_context>

<pallas_src>
import jax
import jax.numpy as jnp
from jax.experimental import pallas as pl
from jax.experimental.pallas import tpu as pltpu


def _embedder_kernel(ex_ref, lab_ref, emb_ref, out_ref):
    TB, SS, D = ex_ref.shape
    C, E = emb_ref.shape
    P = E - D
    f32 = jnp.float32

    # ---- even rows: examples + constant positional one-hot (data movement) ----
    ex = ex_ref[...].astype(f32)                                    # (TB, SS, D)
    row = jax.lax.broadcasted_iota(jnp.int32, (TB, SS, P), 1)
    col = jax.lax.broadcasted_iota(jnp.int32, (TB, SS, P), 2)
    pos = (row == col).astype(f32)                                  # (TB, SS, P)

    # ---- odd rows: label-embedding gather as a tiny (TB*SS, C) @ (C, E) ----
    lab = lab_ref[...]                                              # (TB, SS) i32
    cls = jax.lax.broadcasted_iota(jnp.int32, (TB, SS, C), 2)
    onehot = (lab[..., None] == cls).astype(f32)                    # (TB, SS, C)
    h_lab = jnp.dot(onehot.reshape(TB * SS, C),
                    emb_ref[...].astype(f32),
                    preferred_element_type=f32).reshape(TB, SS, E)  # (TB, SS, E)

    # ---- paired layout: lanes = [example_s | pos_s | label_s]; one dense store
    out_ref[...] = jnp.concatenate([ex, pos, h_lab], axis=-1).astype(out_ref.dtype)


def _pick_batch_tile(B, cap=256):
    """Multiple of 8 that divides B (sublane legal, no padded grid steps),
    capped for VMEM, and yielding >= 2 grid steps when B >= 16 (v7x megacore)."""
    if B <= 8:
        return B                        # block == full dim (always legal)
    cands = [t for t in range(8, min(cap, B // 2) + 1, 8) if B % t == 0]
    return max(cands) if cands else B   # fallback: single full-batch step


def multi_task_input_embedder_v3(examples, labels, tasks, label_embs, task_embs,
                                 *, batch_tile=None):
    """JAX/Pallas equivalent of MultiTaskInputEmbedderV3.forward."""
    # `tasks` / `task_embs` are looked up in the torch forward but never used
    # in the returned tensor; kept for interface parity only.
    del tasks, task_embs
    B, SS, D = examples.shape
    C, E = label_embs.shape
    P = E - D                      # p_dim
    R = 2 * SS - 1                 # output sequence length
    assert P > 0 and D > 0, "emb_dim must exceed example feature dim"
    assert P >= SS, "p_dim (= emb_dim - D) must be >= SS for one_hot(arange(SS), p_dim)"

    TB = batch_tile if batch_tile is not None else _pick_batch_tile(B)
    grid = (pl.cdiv(B, TB),)

    out_pair = pl.pallas_call(
        _embedder_kernel,
        out_shape=jax.ShapeDtypeStruct((B, SS, 2 * E), examples.dtype),
        grid=grid,
        in_specs=[
            pl.BlockSpec((TB, SS, D), lambda i: (i, 0, 0)),   # examples tile
            pl.BlockSpec((TB, SS), lambda i: (i, 0)),         # labels tile (int32)
            pl.BlockSpec((C, E), lambda i: (0, 0)),           # label_embs (resident, KB)
        ],
        out_specs=pl.BlockSpec((TB, SS, 2 * E), lambda i: (i, 0, 0)),
        compiler_params=pltpu.CompilerParams(
            dimension_semantics=("parallel",),
            vmem_limit_bytes=32 * 1024 * 1024),
    )(examples, labels.astype(jnp.int32), label_embs)

    # (B, SS, 2E) -> (B, 2*SS, E) is a free row-major reshape; drop the last
    # (unused) label row to obtain [ex0, lab0, ex1, lab1, ..., ex_{SS-1}].
    return out_pair.reshape(B, 2 * SS, E)[:, :R, :]


if __name__ == "__main__":
    # Shapes consistent with the module: emb_dim must equal D + p_dim
    # (required by hh[:, 0::2] = cat([examples, pos])) and p_dim >= SS.
    B, SS, D, p_dim = 16, 8, 16, 16
    emb_dim = D + p_dim            # 32
    num_classes, num_tasks = 10, 4

    key = jax.random.PRNGKey(0)
    k1, k2, k3, k4, k5 = jax.random.split(key, 5)
    examples = jax.random.normal(k1, (B, SS, D), dtype=jnp.float32)
    labels = jax.random.randint(k2, (B, SS), 0, num_classes, dtype=jnp.int32)
    tasks = jax.random.randint(k3, (B, SS), 0, num_tasks, dtype=jnp.int32)
    # Deterministic "randn / sqrt(emb_dim)" parameter init (matches __init__).
    label_embs = jax.random.normal(
        k4, (num_classes, emb_dim), jnp.float32) / jnp.sqrt(float(emb_dim))
    task_embs = jax.random.normal(
        k5, (num_tasks, emb_dim), jnp.float32) / jnp.sqrt(float(emb_dim))
    # TODO(synk): self.Emb (nn.Linear) is declared in the torch __init__ but never
    # used in forward, so it is intentionally not instantiated here.

    hh = multi_task_input_embedder_v3(examples, labels, tasks, label_embs, task_embs)
    hh = jax.block_until_ready(hh)

    # Pure-JAX reference for correctness.
    pos = jax.nn.one_hot(jnp.arange(SS), p_dim, dtype=examples.dtype)
    h_example_ref = jnp.concatenate(
        [examples, jnp.broadcast_to(pos[None], (B, SS, p_dim))], axis=2)
    h_label_ref = label_embs[labels]
    ref = jnp.zeros((B, 2 * SS - 1, emb_dim), examples.dtype)
    ref = ref.at[:, 0::2].set(h_example_ref).at[:, 1::2].set(h_label_ref[:, :-1])
    assert hh.shape == (B, 2 * SS - 1, emb_dim) and hh.dtype == examples.dtype
    assert jnp.allclose(hh, ref, atol=1e-5), float(jnp.abs(hh - ref).max())

    print("KERNEL_OK")
</pallas_src>

<mosaic_0001>
module attributes {stable_mosaic.version = 11 : i64} {
  func.func @_embedder_kernel(%arg0: i32, %arg1: memref<8x8x16xf32, #tpu.memory_space<vmem>>, %arg2: memref<8x8xi32, #tpu.memory_space<vmem>>, %arg3: memref<10x32xf32, #tpu.memory_space<vmem>>, %arg4: memref<8x8x64xf32, #tpu.memory_space<vmem>>) attributes {dimension_semantics = [#tpu.dimension_semantics<parallel>], iteration_bounds = array<i64: 2>, scalar_prefetch = 0 : i64, scratch_operands = 0 : i64, tpu.core_type = #tpu.core_type<tc>, window_params = [{transform_indices = @transform_0, window_bounds = array<i64: 8, 8, 16>}, {transform_indices = @transform_1, window_bounds = array<i64: 8, 8>}, {pipeline_mode = #tpu.pipeline_mode<synchronous>, transform_indices = @transform_2, window_bounds = array<i64: 10, 32>}, {transform_indices = @transform_3, window_bounds = array<i64: 8, 8, 64>}]} {
    %c0 = arith.constant 0 : index
    %c0_0 = arith.constant 0 : index
    %c0_1 = arith.constant 0 : index
    %0 = vector.load %arg1[%c0, %c0_0, %c0_1] : memref<8x8x16xf32, #tpu.memory_space<vmem>>, vector<8x8x16xf32>
    %1 = tpu.iota {dimensions = array<i32: 1>} : vector<8x8x16xi32>
    %2 = tpu.iota {dimensions = array<i32: 2>} : vector<8x8x16xi32>
    %3 = arith.cmpi eq, %1, %2 : vector<8x8x16xi32>
    %4 = arith.extui %3 : vector<8x8x16xi1> to vector<8x8x16xi32>
    %5 = arith.sitofp %4 : vector<8x8x16xi32> to vector<8x8x16xf32>
    %c0_2 = arith.constant 0 : index
    %c0_3 = arith.constant 0 : index
    %6 = vector.load %arg2[%c0_2, %c0_3] : memref<8x8xi32, #tpu.memory_space<vmem>>, vector<8x8xi32>
    %7 = tpu.iota {dimensions = array<i32: 2>} : vector<8x8x10xi32>
    %8 = vector.shape_cast %6 : vector<8x8xi32> to vector<8x8x1xi32>
    %9 = vector.broadcast %8 : vector<8x8x1xi32> to vector<8x8x10xi32>
    %10 = arith.cmpi eq, %9, %7 : vector<8x8x10xi32>
    %11 = arith.extui %10 : vector<8x8x10xi1> to vector<8x8x10xi32>
    %12 = arith.sitofp %11 : vector<8x8x10xi32> to vector<8x8x10xf32>
    %13 = vector.shape_cast %12 : vector<8x8x10xf32> to vector<64x10xf32>
    %c0_4 = arith.constant 0 : index
    %c0_5 = arith.constant 0 : index
    %14 = vector.load %arg3[%c0_4, %c0_5] : memref<10x32xf32, #tpu.memory_space<vmem>>, vector<10x32xf32>
    %cst = arith.constant dense<0.000000e+00> : vector<64x32xf32>
    %15 = tpu.matmul %13, %14, %cst {dimension_numbers = #tpu.dot_dimension_numbers<[1], [0], [0], [1], [0, 0, 1, 1], [], []>} : vector<64x10xf32>, vector<10x32xf32>, vector<64x32xf32> -> vector<64x32xf32>
    %16 = vector.shape_cast %15 : vector<64x32xf32> to vector<8x8x32xf32>
    %17 = tpu.concatenate %0, %5, %16 in 2 : vector<8x8x16xf32>, vector<8x8x16xf32>, vector<8x8x32xf32> -> vector<8x8x64xf32>
    %c0_6 = arith.constant 0 : index
    %c0_7 = arith.constant 0 : index
    %c0_8 = arith.constant 0 : index
    %18 = vector.load %arg4[%c0_6, %c0_7, %c0_8] : memref<8x8x64xf32, #tpu.memory_space<vmem>>, vector<8x8x64xf32>
    tpu.vector_store %arg4[%c0_6, %c0_7, %c0_8], %17 {strides = array<i32>} : memref<8x8x64xf32, #tpu.memory_space<vmem>>, vector<8x8x64xf32>,
    return
  }
  func.func @transform_0(%arg0: i32) -> (i32, i32, i32) {
    %c0_i32 = arith.constant 0 : i32
    %c0_i32_0 = arith.constant 0 : i32
    %c0_i32_1 = arith.constant 0 : i32
    return %arg0, %c0_i32, %c0_i32_0 : i32, i32, i32
  }
  func.func @transform_1(%arg0: i32) -> (i32, i32) {
    %c0_i32 = arith.constant 0 : i32
    %c0_i32_0 = arith.constant 0 : i32
    return %arg0, %c0_i32 : i32, i32
  }
  func.func @transform_2(%arg0: i32) -> (i32, i32) {
    %c0_i32 = arith.constant 0 : i32
    %c0_i32_0 = arith.constant 0 : i32
    %c0_i32_1 = arith.constant 0 : i32
    return %c0_i32, %c0_i32_0 : i32, i32
  }
  func.func @transform_3(%arg0: i32) -> (i32, i32, i32) {
    %c0_i32 = arith.constant 0 : i32
    %c0_i32_0 = arith.constant 0 : i32
    %c0_i32_1 = arith.constant 0 : i32
    return %arg0, %c0_i32, %c0_i32_0 : i32, i32, i32
  }
}

</mosaic_0001>

<bundles_post_ra>
// kernel: tpu_custom_call.1
= control target key start
LH: loop header
LB: loop body
LE: loop exit
PB: predicated region body
PF: predicated region fallthrough
CT: control target
= control target key end

     0   :  { %8 = vsyncpa [#allocation3], 0  ;;  %s1083_s0 = inlined_call_operand.hbm [shape: f32[16,8,16], index: 0, kind: input, shape index: {}]   ;;  %s1084_s1 = inlined_call_operand.vmem [shape: s32[16,8], index: 1, kind: input, shape index: {}]   ;;  %s1085_s2 = inlined_call_operand.vmem [shape: f32[10,32], index: 2, kind: input, shape index: {}]   ;;  %s1086_s3 = inlined_call_operand.hbm [shape: f32[16,8,64], index: 3, kind: output, shape index: {}]  }
   0x1   :  { %10 = vsyncpa [#allocation3 + $0x1], 0 }
   0x2   :  { %11 = vsyncpa [#allocation4], 0 }
   0x3   :  { %13 = vsyncpa [#allocation4 + $0x1], 0  ;;  %s853_s12 = smov 0   ;;  %s855_s13 = smov 0  }
   0x4   :  { %s857_s14 = smov 0   ;;  %s859_s15 = smov 0  }
   0x5 LB: > { %s874_s16 = sadd.s32 4294967295, %s821_s15   ;;  %s602_s17 = sadd.s32 4294967294, %s821_s15   ;;  %s821_s15 = sphi %s859_s15, %s1099_s15   ;;  %s817_s14 = sphi %s857_s14, %s1098_s14   ;;  %s813_s13 = sphi %s855_s13, %s1097_s13   ;;  %s809_s12 = sphi %s853_s12, %s1096_s12  }
   0x6   : > { %s878_s18 = sadd.s32 1, %s821_s15   ;;  %s26_s19 = sadd.s32 1, %s817_s14 }
   0x7   : > { %s23_s20 = ssub.s32 %s821_s15, %s878_s18  ;;  %p33_p0 = scmp.ne.s32.totalorder %s817_s14, %s813_s13 }
   0x8   : > { %p24_p1 = scmp.eq.s32.totalorder %s23_s20, 0  ;;  %p34_p2 = scmp.eq.s32.totalorder %s821_s15, 0 }
   0x9   : > { %p39_p3 = scmp.ne.s32.totalorder %s813_s13, %s809_s12  ;;  %p40_p4 = scmp.eq.s32.totalorder %s874_s16, 0 }
   0xa   : > { %s890_s21 = scalar_select %p24_p1, %s817_s14, %s26_s19  }
   0xb   : > { %p892_p5 = por %p34_p2, %p33_p0  ;;  %p896_p6 = por %p40_p4, %p39_p3 }
   0xc   : > { %p110_p7 = scmp.eq.s32.totalorder %s874_s16, 1  ;;  %p116_p8 = scmp.eq.s32.totalorder %s602_s17, 1 }
   0xd   : > { %p683_p10 = scmp.lt.s32.totalorder %s821_s15, 2  ;;  %s139_s26 = sand.u32 1, %s817_s14  }
   0xe   : > { %p903_p11 = por %p110_p7, %p33_p0  ;;  %p907_p12 = por %p116_p8, %p39_p3 }
   0xf   : > { %s635_s27 = sshll.u32 %s821_s15, 10  ;;  %s605_s28 = sshll.u32 %s139_s26, 6 }
  0x10   : > { %s1090_s24 = scalar_select %p903_p11, 1, 0 }
  0x11   : > { %s1091_s25 = scalar_select %p907_p12, 1, 0 }
  0x12   : > { %s916_s4 = scalar_lea.hbm %s1083_s0, %s635_s27  ;;  %s143_s5 = scalar_lea.vmem [#allocation2], %s605_s28 }
  0x13   : > { %s150_s6 = sshll.u32 %s143_s5, 4  ;;  %p920_p13 = pnand %p683_p10, %p892_p5  ;;  %s924_s6 = int_to_ptr.vmem [resolvable:$true] %s150_s6 }
  0x14   : > { %s926_s8 = scalar_lea.sflag [#allocation3], %s139_s26  ;;  %s725_s9 = scalar_lea.hbm %s916_s4, 1024 }
  0x15   : > { %p726_p0 = scmp.ne.s32.totalorder %s916_s4, %s725_s9  ;;  %p727_p1 = pneg %p920_p13 }
  0x16   : > { %s730_s17 = scalar_lea.hbm %s1083_s0, 2048  ;;  %p731_p4 = scmp.lt.u32.totalorder %s916_s4, %s1083_s0 }
  0x17   : > { %p728_p2 = pnand %p727_p1, %p726_p0  ;;  %p732_p5 = scmp.lt.u32.totalorder %s730_s17, %s725_s9 }
  0x18   : > { %p734_p8 = scmp.lt.u32.totalorder %s725_s9, %s916_s4 }
  0x19   : > { %p729_p3 = pneg %p728_p2  ;;  %p733_p7 = por %p732_p5, %p731_p4 }
  0x1b   : > { %p735_p10 = por %p734_p8, %p733_p7 }
  0x1d   : > { %p736_p9 = pnand %p735_p10, %p729_p3 }
  0x1f   : > { %739 = shalt.err (!%p736_p9)
}
  0x20   : > { %s740_s22 = scalar_lea.vmem %s924_s6, 1024  ;;  %s823_s26 = smov [#allocation2]  }
  0x21   : > { %p741_p0 = scmp.ne.s32.totalorder %s924_s6, %s740_s22  ;;  %s745_s27 = sshll.u32 %s823_s26, 4  ;;  %s746_s27 = int_to_ptr.vmem [resolvable:$false] %s745_s27 }
  0x22   : > { %s747_s28 = scalar_lea.vmem %s746_s27, 2048  ;;  %p748_p11 = scmp.lt.s32.totalorder %s924_s6, %s746_s27 }
  0x23   : > { %p743_p2 = pnand %p741_p0, %p727_p1  ;;  %p749_p4 = scmp.lt.s32.totalorder %s747_s28, %s740_s22 }
  0x25   : > { %p744_p12 = pneg %p743_p2  ;;  %p750_p5 = por %p749_p4, %p748_p11 }
  0x27   : > { %p751_p7 = pnand %p750_p5, %p744_p12 }
  0x29   : > { %754 = shalt.err (!%p751_p7)
}
  0x2a   : > { %s824_s29 = smov 128   ;;  %s825_s30 = smov 8  }
  0x2b   : > { %678 = dma.hbm_to_vmem [thread:$0]  (!%p920_p13), %s916_s4, 1024, %s924_s6, %s926_s8, %s824_s29, %s824_s29, %s825_s30  }
  0x2c   : > { %p608_p9 = scmp.ge.s32.totalorder %s821_s15, 1  ;;  %p165_p1 = scmp.lt.s32.totalorder %s821_s15, 3 }
  0x2e   : > { %p166_p3 = pnand %p608_p9, %p165_p1 }
  0x2f   : > { %s957_s5 = sand.u32 (!%p166_p3), 1, %s813_s13  }
  0x30   : > { %169 = sbr.rel (%p166_p3) target bundleno = 542 (0x21e), region = 32  ;;  %s609_s9 = sshll.u32 (!%p166_p3), %s957_s5, 6 }
  0x31   : > { %s172_s10 = scalar_lea.sflag (!%p166_p3), [#allocation3], %s957_s5  ;;  %s963_s11 = scalar_lea.vmem (!%p166_p3), [#allocation2], %s609_s9 }
  0x37   : > { %800 = dma.done.wait (%p896_p6), %s172_s10, 1024  }
  0x38   : > { %802 = vsyncadd (%p896_p6), %s172_s10, 4294966272  ;;  %p203_p11 = scmp.lt.s32.totalorder %s874_s16, 1  ;;  %v216_v0 = vlaneseq  ;;  %vm331_vm0 = vcmask 1041408   ;;  %v304_v7 = vld [vmem:[%s1085_s2] sm:$0xff]  ;;  %v305_v8 = vld [vmem:[%s1085_s2 + $0x8] sm:$0x3] }
  0x39   : > { %vm826_vm1 = vmmov 1   ;;  %v663_v15 = vpack.c.bf16 %v305_v8, %v304_v7  ;;  %v827_v23 = vmov 0.0   ;;  %s828_s26 = smov 16   ;;  %vm306_vm4 = vcmask 80896   ;;  %s829_s27 = smov 32   ;;  %v209_v50 = vld [vmem:[%s963_s11 + $0x8] sm:$0xff] }
  0x3a   : > { %s204_s4 = scalar_select %p203_p11, %s874_s16, 1  ;;  %v217_v1 = vshrl.u32 %v216_v0, 7  ;;  %vm664_vm2 = vmpackc.low %vm331_vm0, %vm826_vm1  ;;  %v219_v22 = vand.u32 127, %v216_v0  ;;  %vm476_vm13 = vcmask 130048   ;;  %v208_v51 = vld [vmem:[%s963_s11] sm:$0xff]  ;;  %vm485_vm14 = vcmask 261120  }
  0x3b   : > { %665 = vmatprep.subr.msk.bf16.mxu0 %vm664_vm2, %v663_v15  ;;  %669 = vmatprep.subr.msk.bf16.mxu1 %vm664_vm2, %v663_v15  ;;  %vm494_vm15 = vcmask 523264   ;;  %v213_v57 = vld [vmem:[%s963_s11 + $0x28] sm:$0xff]  ;;  %s996_s28 = scalar_lea.vmem [#allocation5], %s609_s9  ;;  %v212_v59 = vld [vmem:[%s963_s11 + $0x20] sm:$0xff]  ;;  %s636_s30 = sshll.u32 %s874_s16, 10 }
  0x3c   : > { %s611_s6 = sshll.u32 %s204_s4, 3  ;;  %v226_v2 = vsub.s32 0, %v217_v1  ;;  %v233_v3 = vsub.s32 1, %v217_v1  ;;  %v254_v4 = vsub.s32 4, %v217_v1  ;;  %v261_v5 = vsub.s32 5, %v217_v1  ;;  %668 = vmatpush3.bf16.msk.msra.mxu0 %vm664_vm2, %v663_v15  ;;  %670 = vmatpush3.bf16.msk.msra.mxu1 %vm664_vm2, %v663_v15  ;;  %s517_s29 = sshll.u32 %s996_s28, 4  ;;  %s1024_s29 = int_to_ptr.vmem [resolvable:$true] %s517_s29 }
  0x3d   : > { %s206_s17 = scalar_lea.vmem %s1084_s1, %s611_s6  ;;  %v240_v11 = vsub.s32 2, %v217_v1  ;;  %v268_v14 = vsub.s32 6, %v217_v1  ;;  %v247_v18 = vsub.s32 3, %v217_v1  ;;  %v275_v19 = vsub.s32 7, %v217_v1  ;;  %s1032_s4 = scalar_lea.hbm %s1086_s3, %s636_s30 }
  0x3e   : > { %v223_v6 = vld [vmem:[%s206_s17] sm:$0xff]  ;;  %vm220_vm3 = vcmp.eq.s32.totalorder %v217_v1, %v219_v22  ;;  %s504_s16 = scalar_lea.sflag [#allocation4], %s957_s5  ;;  %p1093_p12 = scmp.ne.s32.totalorder %s1090_s24, 0 }
  0x3f   : > { %v227_v9 = vrot.slane %v223_v6, %v226_v2  ;;  %v234_v10 = vrot.slane %v223_v6, %v233_v3  ;;  %v255_v12 = vrot.slane %v223_v6, %v254_v4  ;;  %v262_v13 = vrot.slane %v223_v6, %v261_v5  ;;  %v211_v2 = vld [vmem:[%s963_s11 + $0x18] sm:$0xff]  ;;  %v210_v3 = vld [vmem:[%s963_s11 + $0x10] sm:$0xff]  ;;  %s830_s6 = smov [#allocation5]  }
  0x40   : > { %v241_v16 = vrot.slane %v223_v6, %v240_v11  ;;  %v269_v17 = vrot.slane %v223_v6, %v268_v14  ;;  %v248_v20 = vrot.slane %v223_v6, %v247_v18  ;;  %v276_v21 = vrot.slane %v223_v6, %v275_v19  ;;  %v214_v11 = vld [vmem:[%s963_s11 + $0x30] sm:$0xff]  ;;  %s759_s7 = sshll.u32 %s830_s6, 4  ;;  %s760_s7 = int_to_ptr.vmem [resolvable:$false] %s759_s7 }
  0x41   : > { %229 = vbcast.lane.b32.xlu0 %v227_v9, 256  ;;  %236 = vbcast.lane.b32.xlu1 %v234_v10, 256  ;;  %v612_v24 = vsel %vm220_vm3, 1.0, %v827_v23  ;;  %v215_v9 = vld [vmem:[%s963_s11 + $0x38] sm:$0xff]  ;;  %s755_s11 = scalar_lea.vmem %s1024_s29, 1024  ;;  %s761_s8 = scalar_lea.vmem %s760_s7, 2048 }
  0x42   : > { %p756_p6 = scmp.ne.s32.totalorder %s1024_s29, %s755_s11  ;;  %p762_p10 = scmp.lt.s32.totalorder %s1024_s29, %s760_s7 }
  0x43   : > { %p763_p0 = scmp.lt.s32.totalorder %s761_s8, %s755_s11 }
  0x44   : > { %p757_p13 = pnand %p756_p6, %p1093_p12 }
  0x45   : > { %257 = vbcast.lane.b32.xlu0 %v255_v12, 256  ;;  %264 = vbcast.lane.b32.xlu1 %v262_v13, 256  ;;  %p764_p2 = por %p763_p0, %p762_p10 }
  0x46   : > { %p758_p8 = pneg %p757_p13 }
  0x48   : > { %p765_p4 = pnand %p764_p2, %p758_p8 }
  0x49   : > { %243 = vbcast.lane.b32.xlu0 %v241_v16, 256  ;;  %271 = vbcast.lane.b32.xlu1 %v269_v17, 256 }
  0x4d   : > { %250 = vbcast.lane.b32.xlu0 %v248_v20, 256  ;;  %278 = vbcast.lane.b32.xlu1 %v276_v21, 256 }
  0x51   : > { %441 = vrot.lane.b32.xlu0 %v612_v24, %s828_s26 }
  0xb3   : > { %v230_v25 = vpop.permute.xlu0 %229  ;;  %v237_v26 = vpop.permute.xlu1 %236 }
  0xb4   : > { %vm280_vm5 = vcmp.eq.s32.totalorder %v230_v25, %v219_v22  ;;  %vm281_vm6 = vcmp.eq.s32.totalorder %v237_v26, %v219_v22 }
  0xb5   : > { %v614_v27 = vsel %vm281_vm6, 1.0, %v827_v23  ;;  %v613_v28 = vsel %vm280_vm5, 1.0, %v827_v23 }
  0xb6   : > { %651 = vmatprep.mubr.msk.f32.mxu0 %vm306_vm4, %v613_v28 }
  0xb7   : > { %652 = vmatmul.mubr.msk.f32.vlgmr.msra.gmra.mrb[0].mxu0 %vm306_vm4, %v614_v27  ;;  %v258_v29 = vpop.permute.xlu0 %257  ;;  %v265_v30 = vpop.permute.xlu1 %264 }
  0xb8   : > { %vm284_vm7 = vcmp.eq.s32.totalorder %v258_v29, %v219_v22  ;;  %vm285_vm8 = vcmp.eq.s32.totalorder %v265_v30, %v219_v22 }
  0xb9   : > { %v618_v31 = vsel %vm285_vm8, 1.0, %v827_v23  ;;  %v617_v32 = vsel %vm284_vm7, 1.0, %v827_v23 }
  0xba   : > { %657 = vmatprep.mubr.msk.f32.mxu1 %vm306_vm4, %v617_v32 }
  0xbb   : > { %658 = vmatmul.mubr.msk.f32.vlgmr.msra.gmra.mrb[0].mxu1 %vm306_vm4, %v618_v31  ;;  %v244_v33 = vpop.permute.xlu0 %243  ;;  %v272_v34 = vpop.permute.xlu1 %271 }
  0xbc   : > { %vm282_vm9 = vcmp.eq.s32.totalorder %v244_v33, %v219_v22  ;;  %vm286_vm10 = vcmp.eq.s32.totalorder %v272_v34, %v219_v22 }
  0xbd   : > { %v615_v35 = vsel %vm282_vm9, 1.0, %v827_v23  ;;  %v619_v36 = vsel %vm286_vm10, 1.0, %v827_v23 }
  0xbe   : > { %654 = vmatprep.mubr.msk.f32.mxu0 %vm306_vm4, %v615_v35  ;;  %660 = vmatprep.mubr.msk.f32.mxu1 %vm306_vm4, %v619_v36 }
  0xbf   : > { %v251_v37 = vpop.permute.xlu0 %250  ;;  %v279_v38 = vpop.permute.xlu1 %278 }
  0xc0   : > { %vm283_vm11 = vcmp.eq.s32.totalorder %v251_v37, %v219_v22  ;;  %vm287_vm12 = vcmp.eq.s32.totalorder %v279_v38, %v219_v22 }
  0xc1   : > { %v616_v39 = vsel %vm283_vm11, 1.0, %v827_v23  ;;  %v620_v40 = vsel %vm287_vm12, 1.0, %v827_v23 }
  0xc2   : > { %655 = vmatmul.mubr.msk.f32.gmra.mrb[2].mxu0 %vm306_vm4, %v616_v39  ;;  %661 = vmatmul.mubr.msk.f32.gmra.mrb[2].mxu1 %vm306_vm4, %v620_v40 }
  0xc3   : > { %v442_v49 = vpop.permute.xlu0 %441 }
  0xc4   : > { %v478_v52 = vsel %vm476_vm13, %v209_v50, %v442_v49  ;;  %v477_v53 = vsel %vm476_vm13, %v208_v51, %v442_v49  ;;  %v482_v61 = vsel %vm476_vm13, %v213_v57, %v442_v49  ;;  %v481_v0 = vsel %vm476_vm13, %v212_v59, %v442_v49 }
  0xc5   : > { %v480_v5 = vsel %vm476_vm13, %v211_v2, %v442_v49  ;;  %v479_v8 = vsel %vm476_vm13, %v210_v3, %v442_v49  ;;  %v484_v13 = vsel %vm476_vm13, %v215_v9, %v442_v49  ;;  %v483_v16 = vsel %vm476_vm13, %v214_v11, %v442_v49 }
 0x18a   : > { %v653_v41 = vpop.f32.mrb[0].mxu0 }
 0x18b   : > { %454 = vrot.lane.b32.xlu0 %v653_v41, %s829_s27  ;;  %v401_v42 = vpop.f32.mrb[1].mxu0 }
 0x18c   : > { %452 = vrot.lane.b32.xlu1 %v401_v42, %s829_s27 }
 0x18e   : > { %v659_v43 = vpop.f32.mrb[0].mxu1 }
 0x18f   : > { %462 = vrot.lane.b32.xlu0 %v659_v43, %s829_s27  ;;  %v421_v44 = vpop.f32.mrb[1].mxu1 }
 0x190   : > { %460 = vrot.lane.b32.xlu1 %v421_v44, %s829_s27 }
 0x195   : > { %v656_v45 = vpop.f32.mrb[2].mxu0  ;;  %v662_v46 = vpop.f32.mrb[2].mxu1 }
 0x196   : > { %458 = vrot.lane.b32.xlu0 %v656_v45, %s829_s27  ;;  %v411_v47 = vpop.f32.mrb[3].mxu0  ;;  %v431_v48 = vpop.f32.mrb[3].mxu1 }
 0x197   : > { %456 = vrot.lane.b32.xlu1 %v411_v47, %s829_s27 }
 0x19a   : > { %466 = vrot.lane.b32.xlu0 %v662_v46, %s829_s27 }
 0x19b   : > { %464 = vrot.lane.b32.xlu1 %v431_v48, %s829_s27 }
 0x1fd   : > { %v455_v54 = vpop.permute.xlu0 %454 }
 0x1fe   : > { %v487_v55 = vsel %vm485_vm14, %v478_v52, %v455_v54  ;;  %v453_v56 = vpop.permute.xlu1 %452 }
 0x1ff   : > { %496 = vst.msk [vmem:[%s996_s28 + $0x8] sm:$0xff] %vm494_vm15, %v487_v55  ;;  %v486_v58 = vsel %vm485_vm14, %v477_v53, %v453_v56 }
 0x200   : > { %495 = vst.msk [vmem:[%s996_s28] sm:$0xff] %vm494_vm15, %v486_v58 }
 0x201   : > { %v463_v60 = vpop.permute.xlu0 %462 }
 0x202   : > { %v491_v62 = vsel %vm485_vm14, %v482_v61, %v463_v60  ;;  %v461_v63 = vpop.permute.xlu1 %460 }
 0x203   : > { %500 = vst.msk [vmem:[%s996_s28 + $0x28] sm:$0xff] %vm494_vm15, %v491_v62  ;;  %v490_v1 = vsel %vm485_vm14, %v481_v0, %v461_v63 }
 0x204   : > { %499 = vst.msk [vmem:[%s996_s28 + $0x20] sm:$0xff] %vm494_vm15, %v490_v1 }
 0x208   : > { %v459_v4 = vpop.permute.xlu0 %458 }
 0x209   : > { %v489_v6 = vsel %vm485_vm14, %v480_v5, %v459_v4  ;;  %v457_v7 = vpop.permute.xlu1 %456 }
 0x20a   : > { %498 = vst.msk [vmem:[%s996_s28 + $0x18] sm:$0xff] %vm494_vm15, %v489_v6  ;;  %v488_v10 = vsel %vm485_vm14, %v479_v8, %v457_v7 }
 0x20b   : > { %497 = vst.msk [vmem:[%s996_s28 + $0x10] sm:$0xff] %vm494_vm15, %v488_v10 }
 0x20c   : > { %v467_v12 = vpop.permute.xlu0 %466 }
 0x20d   : > { %v493_v14 = vsel %vm485_vm14, %v484_v13, %v467_v12  ;;  %v465_v15 = vpop.permute.xlu1 %464 }
 0x20e   : > { %502 = vst.msk [vmem:[%s996_s28 + $0x38] sm:$0xff] %vm494_vm15, %v493_v14  ;;  %v492_v17 = vsel %vm485_vm14, %v483_v16, %v465_v15 }
 0x20f   : > { %501 = vst.msk [vmem:[%s996_s28 + $0x30] sm:$0xff] %vm494_vm15, %v492_v17 }
 0x210   : > { %768 = shalt.err (!%p765_p4)
}
 0x211   : > { %s769_s17 = scalar_lea.hbm %s1032_s4, 1024  ;;  %s773_s20 = scalar_lea.hbm %s1086_s3, 2048 }
 0x212   : > { %p770_p5 = scmp.ne.s32.totalorder %s1032_s4, %s769_s17  ;;  %p774_p1 = scmp.lt.u32.totalorder %s1032_s4, %s1086_s3 }
 0x213   : > { %p775_p3 = scmp.lt.u32.totalorder %s773_s20, %s769_s17  ;;  %p777_p6 = scmp.lt.u32.totalorder %s769_s17, %s1032_s4 }
 0x214   : > { %p771_p7 = pnand %p770_p5, %p1093_p12 }
 0x215   : > { %p776_p11 = por %p775_p3, %p774_p1 }
 0x216   : > { %p772_p9 = pneg %p771_p7 }
 0x217   : > { %p778_p13 = por %p777_p6, %p776_p11 }
 0x219   : > { %p779_p8 = pnand %p778_p13, %p772_p9 }
 0x21b   : > { %782 = shalt.err (!%p779_p8)
}
 0x21c   : > { %s831_s27 = smov 128   ;;  %s832_s28 = smov 8  }
 0x21d   : > { %673 = dma.vmem_to_hbm [thread:$0]  (%p1093_p12), %s1024_s29, 1024, %s1032_s4, %s504_s16, %s831_s27, %s831_s27, %s832_s28  }
 0x21e PF: > { %s532_s30 = sand.u32 1, %s809_s12   ;;  %p1094_p10 = scmp.ne.s32.totalorder %s1091_s25, 0 }
 0x21f   : > { %p1095_p0 = scmp.ge.s32.totalorder %s821_s15, 2  ;;  %s533_s9 = scalar_lea.sflag [#allocation4], %s532_s30 }
 0x221   : > { %p680_p2 = pnand %p1095_p0, %p1094_p10 }
 0x223   : > { %804 = dma.done.wait (!%p680_p2), %s533_s9, 1024  }
 0x224   : > { %806 = vsyncadd (!%p680_p2), %s533_s9, 4294966272  ;;  %p16_p4 = scmp.ge.s32.totalorder %s878_s18, 4   ;;  %s1096_s12 = smov %s813_s13 }
 0x225   : > { %s1097_s13 = smov %s817_s14  ;;  %s1098_s14 = smov %s890_s21 }
 0x226   : > { %s1099_s15 = smov %s878_s18  ;;  %18 = sbr.rel (!%p16_p4) target bundleno = 5 (0x5), region = 80 }
 0x22d   :  { %538 = vsyncpa [#allocation3], 1 }
 0x22e   :  { %540 = vsyncpa [#allocation3 + $0x1], 1 }
 0x22f   :  { %541 = vsyncpa [#allocation4], 1 }
 0x230   :  { %543 = vsyncpa [#allocation4 + $0x1], 1 }

</bundles_post_ra>
